<compile_context>
chip_gen: v7x
topology: tpu7x:2x2x1
jax: 0.10.0
libtpu: 0.0.40
codegen_flags: <defaults>
</compile_context>

<pallas_src>
import functools

import jax
import jax.numpy as jnp
import numpy as np
from jax.experimental import pallas as pl
from jax.experimental.pallas import tpu as pltpu


# Layer table: (row offset into packed weight/bias buffers, Cout, Cin,
#               run the (.,128)@(128,128) A_hat matmul first?)
# Row offsets 0/32/96/128 are sublane-aligned for both f32 and bf16 packing.
_LAYERS = (
    (0,   32,  3, True),    # GCNConv(3, 32)   -> A-first (M = 3)
    (32,  64, 32, True),    # GCNConv(32, 64)  -> A-first (M = 32)
    (96,  32, 64, False),   # GCNConv(64, 32)  -> W-first (M = 32)
    (128,  3, 32, False),   # GCNConv(32, 3)   -> W-first (M = 3)
)


# ---------------------------------------------------------------------------
# Pallas kernel: four GCNConv + ReLU layers + heatmap, fully fused.
#   per layer (feature-major, A_hat symmetric):
#       H_cn <- relu( W^T @ H_cn @ A_hat + b )
# ---------------------------------------------------------------------------
def _fused_gcn_kernel(a_ref, x_ref, w_ref, b_ref, s_ref, o_ref, fa_ref):
    # Feature-major activations (C, N); transpose the (N, 3) input in-kernel.
    h = x_ref[...].T                                         # (3, N) f32

    for r0, cout, cin, a_first in _LAYERS:
        w = w_ref[r0:r0 + cout, 0:cin]                       # (Cout, Cin) bf16
        b = b_ref[r0:r0 + cout, :]                           # (Cout, N)  f32
        hb = h.astype(jnp.bfloat16)
        if a_first:
            # (Cin, N) @ (N, N) first: big matmul on the smaller channel dim.
            ha = jnp.dot(hb, a_ref[...],
                         preferred_element_type=jnp.float32)         # (Cin, N)
            y = jnp.dot(w, ha.astype(jnp.bfloat16),
                        preferred_element_type=jnp.float32)          # (Cout, N)
        else:
            # (Cout, Cin) @ (Cin, N) first, then the 128x128 A_hat matmul.
            wh = jnp.dot(w, hb, preferred_element_type=jnp.float32)  # (Cout, N)
            y = jnp.dot(wh.astype(jnp.bfloat16), a_ref[...],
                        preferred_element_type=jnp.float32)          # (Cout, N)
        h = jnp.maximum(y + b, 0.0)                          # ReLU, (Cout, N) f32

    # Node-major output (N, 3) — layout change done in-kernel.
    o_ref[...] = h.T.astype(o_ref.dtype)

    # Fused heatmap: face_attr[f] = sum_c sum_{v in face_f} x_out[v, c]
    #              = (1_3^T @ H_cn) @ S ,  S[n, f] = multiplicity of node n in face f.
    node_sum = jnp.sum(h, axis=0, keepdims=True)             # (1, N) f32
    fa_ref[...] = jnp.dot(node_sum, s_ref[...],
                          preferred_element_type=jnp.float32)        # (1, F)


def fused_gcn_forward(x, a_hat_bf16, w_pack, b_pack, s_inc):
    """All four relu(GCNConv) layers + heatmap in one VMEM-resident pallas_call."""
    n = x.shape[0]
    f = s_inc.shape[1]
    vmem = pl.BlockSpec(memory_space=pltpu.MemorySpace.VMEM)
    return pl.pallas_call(
        _fused_gcn_kernel,
        out_shape=(jax.ShapeDtypeStruct((n, 3), jnp.float32),   # data.x
                   jax.ShapeDtypeStruct((1, f), jnp.float32)),  # data.face_attr
        in_specs=[vmem] * 5,
        out_specs=(vmem, vmem),
    )(a_hat_bf16, x, w_pack, b_pack, s_inc)


# ---------------------------------------------------------------------------
# One-time setup helpers (run OUTSIDE the jitted forward).
# ---------------------------------------------------------------------------
def build_normalized_adjacency(edge_index, num_nodes):
    """Dense symmetric GCN normalization: D^{-1/2} (A + I) D^{-1/2}."""
    src, dst = edge_index
    a = jnp.zeros((num_nodes, num_nodes), jnp.float32)
    a = a.at[dst, src].set(1.0)
    a = jnp.maximum(a, a.T)                                   # force symmetry
    a = jnp.maximum(a, jnp.eye(num_nodes, dtype=jnp.float32))  # self loops
    deg = a.sum(axis=1)
    d = jnp.where(deg > 0, jax.lax.rsqrt(deg), 0.0)
    a_hat = d[:, None] * a * d[None, :]
    return 0.5 * (a_hat + a_hat.T)                            # exactly symmetric


def build_face_incidence(face, num_nodes):
    """S[n, f] = multiplicity of node n among the 3 vertices of face f."""
    num_faces = face.shape[1]
    s = jnp.zeros((num_nodes, num_faces), jnp.float32)
    cols = jnp.arange(num_faces)
    for r in range(3):
        s = s.at[face[r], cols].add(1.0)
    return s


def init_params(key):
    """Glorot-uniform-like init; PyTorch layout: w (Cin, Cout), b (Cout,)."""
    dims = [(3, 32), (32, 64), (64, 32), (32, 3)]
    params = []
    for i, (cin, cout) in enumerate(dims):
        kw = jax.random.fold_in(key, 2 * i)
        limit = (6.0 / (cin + cout)) ** 0.5
        w = jax.random.uniform(kw, (cin, cout), jnp.float32, -limit, limit)
        b = jnp.zeros((cout,), jnp.float32)
        params.append((w, b))
    return params


def pack_params(params, num_nodes):
    """One-time repack into kernel layout (no per-call transposes/reshapes).

    w_pack: (sum Cout, max Cin) bf16 -- W^T blocks stacked on rows, zero-padded
            on columns; row offsets 0/32/96/128 are sublane aligned.
    b_pack: (sum Cout, N) f32 -- biases pre-broadcast over the lane (node) dim.
    """
    max_cin = max(w.shape[0] for w, _ in params)
    w_rows, b_rows = [], []
    for w, b in params:
        wt = w.T                                              # (Cout, Cin)
        w_rows.append(jnp.pad(wt, ((0, 0), (0, max_cin - wt.shape[1]))))
        b_rows.append(jnp.broadcast_to(b[:, None], (b.shape[0], num_nodes)))
    w_pack = jnp.concatenate(w_rows, axis=0).astype(jnp.bfloat16)
    b_pack = jnp.concatenate(b_rows, axis=0).astype(jnp.float32)
    return w_pack, b_pack


def mesh_unpool(x, pool_spec):
    # TODO(synk): mesh_unpool is not defined in the provided module source;
    # treated as identity (which is what allows fusing all four layers).
    del pool_spec
    return x


@functools.partial(jax.jit, static_argnames=("heatmap",))
def net_forward(x, a_hat_bf16, w_pack, b_pack, s_inc, heatmap=True):
    """Four fused GCNConv+ReLU layers (identity mesh_unpool between them)."""
    x_out, face_attr = fused_gcn_forward(x, a_hat_bf16, w_pack, b_pack, s_inc)
    x_out = mesh_unpool(x_out, None)
    if heatmap:
        # data.face_attr = data.x[data.face.t()].sum(-1).sum(-1), fused in-kernel.
        return x_out, face_attr.reshape(-1)
    return x_out, None


def reference_forward(x, a_hat, params):
    """Pure-JAX node-major f32 reference for correctness checking."""
    h = x
    for w, b in params:
        h = jnp.maximum(a_hat @ h @ w + b[None, :], 0.0)
    return h


# ---------------------------------------------------------------------------
if __name__ == "__main__":
    key = jax.random.PRNGKey(0)
    N = 128          # number of mesh vertices (lane-width friendly)
    F_FACES = 32     # number of faces for the heatmap

    kx, ke, kp = jax.random.split(key, 3)

    # Node features: (N, 3) vertex positions.
    x = jax.random.normal(kx, (N, 3), jnp.float32)

    # Undirected graph: ring + random chords (both edge directions).
    idx = jnp.arange(N, dtype=jnp.int32)
    ring_src, ring_dst = idx, (idx + 1) % N
    rand_src = jax.random.randint(ke, (64,), 0, N, dtype=jnp.int32)
    rand_dst = jax.random.randint(jax.random.fold_in(ke, 1), (64,), 0, N,
                                  dtype=jnp.int32)
    src = jnp.concatenate([ring_src, ring_dst, rand_src, rand_dst])
    dst = jnp.concatenate([ring_dst, ring_src, rand_dst, rand_src])
    edge_index = jnp.stack([src, dst])          # (2, 384)

    # Faces: (3, F) vertex-index triples.
    face = jnp.stack([idx[:F_FACES],
                      (idx[:F_FACES] + 1) % N,
                      (idx[:F_FACES] + 2) % N]).astype(jnp.int32)

    params = init_params(kp)

    # ---- One-time setup: everything in kernel layout, outside the jitted fwd.
    a_hat = build_normalized_adjacency(edge_index, N)       # f32, for reference
    a_hat_bf16 = a_hat.astype(jnp.bfloat16)                 # kernel MXU operand
    w_pack, b_pack = pack_params(params, N)
    s_inc = build_face_incidence(face, N)

    out, face_attr = net_forward(x, a_hat_bf16, w_pack, b_pack, s_inc,
                                 heatmap=True)
    jax.block_until_ready((out, face_attr))

    assert out.shape == (N, 3) and out.dtype == jnp.float32
    assert face_attr.shape == (F_FACES,)

    # Correctness vs. plain-JAX f32 reference (kernel uses bf16 MXU operands
    # with f32 accumulation, so allow bf16-level tolerance).
    ref = reference_forward(x, a_hat, params)
    np.testing.assert_allclose(np.asarray(out), np.asarray(ref),
                               rtol=5e-2, atol=5e-3)

    # Fused heatmap must match the gather-based definition on the kernel output.
    fa_ref = out[face.T].sum(axis=-1).sum(axis=-1)
    np.testing.assert_allclose(np.asarray(face_attr), np.asarray(fa_ref),
                               rtol=2e-2, atol=2e-3)

    print("KERNEL_OK")
</pallas_src>

<mosaic_0001>
module attributes {stable_mosaic.version = 11 : i64} {
  func.func @_fused_gcn_kernel(%arg0: memref<128x128xbf16, #tpu.memory_space<vmem>>, %arg1: memref<128x3xf32, #tpu.memory_space<vmem>>, %arg2: memref<131x64xbf16, #tpu.memory_space<vmem>>, %arg3: memref<131x128xf32, #tpu.memory_space<vmem>>, %arg4: memref<128x32xf32, #tpu.memory_space<vmem>>, %arg5: memref<128x3xf32, #tpu.memory_space<vmem>>, %arg6: memref<1x32xf32, #tpu.memory_space<vmem>>) attributes {dimension_semantics = [], scalar_prefetch = 0 : i64, scratch_operands = 0 : i64, tpu.core_type = #tpu.core_type<tc>} {
    %c0 = arith.constant 0 : index
    %c0_0 = arith.constant 0 : index
    %0 = vector.load %arg1[%c0, %c0_0] : memref<128x3xf32, #tpu.memory_space<vmem>>, vector<128x3xf32>
    %1 = tpu.transpose %0, [1, 0] : vector<128x3xf32> -> vector<3x128xf32>
    %c0_1 = arith.constant 0 : index
    %c0_2 = arith.constant 0 : index
    %2 = vector.load %arg2[%c0_1, %c0_2] : memref<131x64xbf16, #tpu.memory_space<vmem>>, vector<32x3xbf16>
    %c0_3 = arith.constant 0 : index
    %c0_4 = arith.constant 0 : index
    %3 = vector.load %arg3[%c0_3, %c0_4] : memref<131x128xf32, #tpu.memory_space<vmem>>, vector<32x128xf32>
    %4 = arith.truncf %1 : vector<3x128xf32> to vector<3x128xbf16>
    %c0_5 = arith.constant 0 : index
    %c0_6 = arith.constant 0 : index
    %5 = vector.load %arg0[%c0_5, %c0_6] : memref<128x128xbf16, #tpu.memory_space<vmem>>, vector<128x128xbf16>
    %cst = arith.constant dense<0.000000e+00> : vector<3x128xf32>
    %6 = tpu.matmul %4, %5, %cst {dimension_numbers = #tpu.dot_dimension_numbers<[1], [0], [0], [1], [0, 0, 1, 1], [], []>} : vector<3x128xbf16>, vector<128x128xbf16>, vector<3x128xf32> -> vector<3x128xf32>
    %7 = arith.truncf %6 : vector<3x128xf32> to vector<3x128xbf16>
    %cst_7 = arith.constant dense<0.000000e+00> : vector<32x128xf32>
    %8 = tpu.matmul %2, %7, %cst_7 {dimension_numbers = #tpu.dot_dimension_numbers<[1], [0], [0], [1], [0, 0, 1, 1], [], []>} : vector<32x3xbf16>, vector<3x128xbf16>, vector<32x128xf32> -> vector<32x128xf32>
    %9 = arith.addf %8, %3 : vector<32x128xf32>
    %cst_8 = arith.constant 0.000000e+00 : f32
    %10 = vector.broadcast %cst_8 : f32 to vector<32x128xf32>
    %11 = arith.maximumf %9, %10 : vector<32x128xf32>
    %c32 = arith.constant 32 : index
    %c0_9 = arith.constant 0 : index
    %12 = vector.load %arg2[%c32, %c0_9] : memref<131x64xbf16, #tpu.memory_space<vmem>>, vector<64x32xbf16>
    %c32_10 = arith.constant 32 : index
    %c0_11 = arith.constant 0 : index
    %13 = vector.load %arg3[%c32_10, %c0_11] : memref<131x128xf32, #tpu.memory_space<vmem>>, vector<64x128xf32>
    %14 = arith.truncf %11 : vector<32x128xf32> to vector<32x128xbf16>
    %c0_12 = arith.constant 0 : index
    %c0_13 = arith.constant 0 : index
    %15 = vector.load %arg0[%c0_12, %c0_13] : memref<128x128xbf16, #tpu.memory_space<vmem>>, vector<128x128xbf16>
    %cst_14 = arith.constant dense<0.000000e+00> : vector<32x128xf32>
    %16 = tpu.matmul %14, %15, %cst_14 {dimension_numbers = #tpu.dot_dimension_numbers<[1], [0], [0], [1], [0, 0, 1, 1], [], []>} : vector<32x128xbf16>, vector<128x128xbf16>, vector<32x128xf32> -> vector<32x128xf32>
    %17 = arith.truncf %16 : vector<32x128xf32> to vector<32x128xbf16>
    %cst_15 = arith.constant dense<0.000000e+00> : vector<64x128xf32>
    %18 = tpu.matmul %12, %17, %cst_15 {dimension_numbers = #tpu.dot_dimension_numbers<[1], [0], [0], [1], [0, 0, 1, 1], [], []>} : vector<64x32xbf16>, vector<32x128xbf16>, vector<64x128xf32> -> vector<64x128xf32>
    %19 = arith.addf %18, %13 : vector<64x128xf32>
    %cst_16 = arith.constant 0.000000e+00 : f32
    %20 = vector.broadcast %cst_16 : f32 to vector<64x128xf32>
    %21 = arith.maximumf %19, %20 : vector<64x128xf32>
    %c96 = arith.constant 96 : index
    %c0_17 = arith.constant 0 : index
    %22 = vector.load %arg2[%c96, %c0_17] : memref<131x64xbf16, #tpu.memory_space<vmem>>, vector<32x64xbf16>
    %c96_18 = arith.constant 96 : index
    %c0_19 = arith.constant 0 : index
    %23 = vector.load %arg3[%c96_18, %c0_19] : memref<131x128xf32, #tpu.memory_space<vmem>>, vector<32x128xf32>
    %24 = arith.truncf %21 : vector<64x128xf32> to vector<64x128xbf16>
    %cst_20 = arith.constant dense<0.000000e+00> : vector<32x128xf32>
    %25 = tpu.matmul %22, %24, %cst_20 {dimension_numbers = #tpu.dot_dimension_numbers<[1], [0], [0], [1], [0, 0, 1, 1], [], []>} : vector<32x64xbf16>, vector<64x128xbf16>, vector<32x128xf32> -> vector<32x128xf32>
    %26 = arith.truncf %25 : vector<32x128xf32> to vector<32x128xbf16>
    %c0_21 = arith.constant 0 : index
    %c0_22 = arith.constant 0 : index
    %27 = vector.load %arg0[%c0_21, %c0_22] : memref<128x128xbf16, #tpu.memory_space<vmem>>, vector<128x128xbf16>
    %cst_23 = arith.constant dense<0.000000e+00> : vector<32x128xf32>
    %28 = tpu.matmul %26, %27, %cst_23 {dimension_numbers = #tpu.dot_dimension_numbers<[1], [0], [0], [1], [0, 0, 1, 1], [], []>} : vector<32x128xbf16>, vector<128x128xbf16>, vector<32x128xf32> -> vector<32x128xf32>
    %29 = arith.addf %28, %23 : vector<32x128xf32>
    %cst_24 = arith.constant 0.000000e+00 : f32
    %30 = vector.broadcast %cst_24 : f32 to vector<32x128xf32>
    %31 = arith.maximumf %29, %30 : vector<32x128xf32>
    %c128 = arith.constant 128 : index
    %c0_25 = arith.constant 0 : index
    %32 = vector.load %arg2[%c128, %c0_25] : memref<131x64xbf16, #tpu.memory_space<vmem>>, vector<3x32xbf16>
    %c128_26 = arith.constant 128 : index
    %c0_27 = arith.constant 0 : index
    %33 = vector.load %arg3[%c128_26, %c0_27] : memref<131x128xf32, #tpu.memory_space<vmem>>, vector<3x128xf32>
    %34 = arith.truncf %31 : vector<32x128xf32> to vector<32x128xbf16>
    %cst_28 = arith.constant dense<0.000000e+00> : vector<3x128xf32>
    %35 = tpu.matmul %32, %34, %cst_28 {dimension_numbers = #tpu.dot_dimension_numbers<[1], [0], [0], [1], [0, 0, 1, 1], [], []>} : vector<3x32xbf16>, vector<32x128xbf16>, vector<3x128xf32> -> vector<3x128xf32>
    %36 = arith.truncf %35 : vector<3x128xf32> to vector<3x128xbf16>
    %c0_29 = arith.constant 0 : index
    %c0_30 = arith.constant 0 : index
    %37 = vector.load %arg0[%c0_29, %c0_30] : memref<128x128xbf16, #tpu.memory_space<vmem>>, vector<128x128xbf16>
    %cst_31 = arith.constant dense<0.000000e+00> : vector<3x128xf32>
    %38 = tpu.matmul %36, %37, %cst_31 {dimension_numbers = #tpu.dot_dimension_numbers<[1], [0], [0], [1], [0, 0, 1, 1], [], []>} : vector<3x128xbf16>, vector<128x128xbf16>, vector<3x128xf32> -> vector<3x128xf32>
    %39 = arith.addf %38, %33 : vector<3x128xf32>
    %cst_32 = arith.constant 0.000000e+00 : f32
    %40 = vector.broadcast %cst_32 : f32 to vector<3x128xf32>
    %41 = arith.maximumf %39, %40 : vector<3x128xf32>
    %42 = tpu.transpose %41, [1, 0] : vector<3x128xf32> -> vector<128x3xf32>
    %c0_33 = arith.constant 0 : index
    %c0_34 = arith.constant 0 : index
    %43 = vector.load %arg5[%c0_33, %c0_34] : memref<128x3xf32, #tpu.memory_space<vmem>>, vector<128x3xf32>
    tpu.vector_store %arg5[%c0_33, %c0_34], %42 {strides = array<i32>} : memref<128x3xf32, #tpu.memory_space<vmem>>, vector<128x3xf32>,
    %cst_35 = arith.constant dense<0.000000e+00> : vector<128xf32>
    %44 = vector.multi_reduction <add>, %41, %cst_35 [0] : vector<3x128xf32> to vector<128xf32>
    %45 = vector.shape_cast %44 : vector<128xf32> to vector<1x128xf32>
    %c0_36 = arith.constant 0 : index
    %c0_37 = arith.constant 0 : index
    %46 = vector.load %arg4[%c0_36, %c0_37] : memref<128x32xf32, #tpu.memory_space<vmem>>, vector<128x32xf32>
    %cst_38 = arith.constant dense<0.000000e+00> : vector<1x32xf32>
    %47 = tpu.matmul %45, %46, %cst_38 {dimension_numbers = #tpu.dot_dimension_numbers<[1], [0], [0], [1], [0, 0, 1, 1], [], []>} : vector<1x128xf32>, vector<128x32xf32>, vector<1x32xf32> -> vector<1x32xf32>
    %c0_39 = arith.constant 0 : index
    %c0_40 = arith.constant 0 : index
    %48 = vector.load %arg6[%c0_39, %c0_40] : memref<1x32xf32, #tpu.memory_space<vmem>>, vector<1x32xf32>
    tpu.vector_store %arg6[%c0_39, %c0_40], %47 {strides = array<i32>} : memref<1x32xf32, #tpu.memory_space<vmem>>, vector<1x32xf32>,
    return
  }
}

</mosaic_0001>

<bundles_post_ra>
// kernel: net_forward.1
= control target key start
LH: loop header
LB: loop body
LE: loop exit
PB: predicated region body
PF: predicated region fallthrough
CT: control target
= control target key end

     0   :  { %v1142_v1 = vmov 0.0   ;;  %vm1143_vm0 = vmmov 0   ;;  %s1555_s0 = inlined_call_operand.vmem [shape: bf16[128,128], index: 0, kind: input, shape index: {}]   ;;  %s1556_s1 = inlined_call_operand.vmem [shape: f32[128,3], index: 1, kind: input, shape index: {}]   ;;  %s1557_s2 = inlined_call_operand.vmem [shape: bf16[131,64], index: 2, kind: input, shape index: {}]   ;;  %s1558_s3 = inlined_call_operand.vmem [shape: f32[131,128], index: 3, kind: input, shape index: {}]   ;;  %s1559_s4 = inlined_call_operand.vmem [shape: f32[128,32], index: 4, kind: input, shape index: {}]   ;;  %s1560_s5 = inlined_call_operand.vmem [shape: f32[128,3], index: 5, kind: output, shape index: {0}]   ;;  %s1561_s6 = inlined_call_operand.hbm [shape: f32[1,32], index: 6, kind: output, shape index: {1}]  }
   0x1   :  { %v24_v0 = vld [vmem:[%s1556_s1] sm:$0xff]  ;;  %920 = vmatprep.subr.bf16.mxu0 %v1142_v1  ;;  %v25_v2 = vld [vmem:[%s1556_s1 + $0x8] sm:$0xff]  ;;  %936 = vmatprep.mubr.msk.bf16.mxu0 %vm1143_vm0, %v1142_v1  ;;  %v26_v3 = vld [vmem:[%s1556_s1 + $0x10] sm:$0xff] }
   0x2   :  { %40 = vxpose.xlu0.b32.start [1/16] (narrow) %v24_v0, 8  ;;  %v1197_v4 = vld [vmem:[%s1555_s0] sm:$0xff]   ;;  %v1203_v5 = vld [vmem:[%s1555_s0 + $0x8] sm:$0xff]   ;;  %v27_v6 = vld [vmem:[%s1556_s1 + $0x18] sm:$0xff] }
   0x3   :  { %921 = vmatpush3.bf16.msra.mxu0 %v1197_v4  ;;  %v1213_v7 = vld [vmem:[%s1555_s0 + $0x10] sm:$0xff]   ;;  %v28_v8 = vld [vmem:[%s1556_s1 + $0x20] sm:$0xff]  ;;  %v1222_v9 = vld [vmem:[%s1555_s0 + $0x18] sm:$0xff]  }
   0x4   :  { %922 = vmatprep.subr.bf16.mxu0 %v1142_v1  ;;  %v29_v10 = vld [vmem:[%s1556_s1 + $0x28] sm:$0xff] }
   0x6   :  { %41 = vxpose.xlu0.b32.cont [2/16] (narrow) %v25_v2, 8 }
   0x7   :  { %923 = vmatpush3.bf16.msra.mxu0 %v1203_v5 }
   0x8   :  { %924 = vmatprep.subr.bf16.mxu0 %v1142_v1 }
   0xa   :  { %42 = vxpose.xlu0.b32.cont [3/16] (narrow) %v26_v3, 8 }
   0xb   :  { %925 = vmatpush3.bf16.msra.mxu0 %v1213_v7 }
   0xc   :  { %926 = vmatprep.subr.bf16.mxu0 %v1142_v1 }
   0xe   :  { %43 = vxpose.xlu0.b32.cont [4/16] (narrow) %v27_v6, 8 }
  0x12   :  { %44 = vxpose.xlu0.b32.cont [5/16] (narrow) %v28_v8, 8 }
  0x13   :  { %12 = vsyncpa [#allocation3], 0  ;;  %927 = vmatpush3.bf16.msra.mxu0 %v1222_v9  ;;  %v1233_v11 = vld [vmem:[%s1555_s0 + $0x20] sm:$0xff]   ;;  %v30_v12 = vld [vmem:[%s1556_s1 + $0x30] sm:$0xff]  ;;  %vm196_vm1 = vcmask 23552   ;;  %vm203_vm2 = vcmask 1040384  }
  0x14   :  { %928 = vmatprep.subr.bf16.mxu0 %v1142_v1  ;;  %v1243_v13 = vld [vmem:[%s1555_s0 + $0x28] sm:$0xff]   ;;  %v31_v14 = vld [vmem:[%s1556_s1 + $0x38] sm:$0xff]  ;;  %v1253_v15 = vld [vmem:[%s1555_s0 + $0x30] sm:$0xff]   ;;  %vm204_vm3 = vcmask 1041408   ;;  %v1144_v28 = vmov 65535   ;;  %vm352_vm4 = vcmask 261120  }
  0x15   :  { %v32_v16 = vld [vmem:[%s1556_s1 + $0x40] sm:$0xff]  ;;  %v1263_v17 = vld [vmem:[%s1555_s0 + $0x38] sm:$0xff]   ;;  %v33_v18 = vld [vmem:[%s1556_s1 + $0x48] sm:$0xff]  ;;  %v205_v29 = vsel %vm203_vm2, 4294967295, %v1144_v28  ;;  %vm460_vm5 = vcmask 523264   ;;  %vm708_vm6 = vcmask 1042432  }
  0x16   :  { %45 = vxpose.xlu0.b32.cont [6/16] (narrow) %v29_v10, 8  ;;  %v34_v19 = vld [vmem:[%s1556_s1 + $0x50] sm:$0xff]  ;;  %v35_v20 = vld [vmem:[%s1556_s1 + $0x58] sm:$0xff]  ;;  %v36_v21 = vld [vmem:[%s1556_s1 + $0x60] sm:$0xff]  ;;  %v206_v31 = vsel %vm204_vm3, %v205_v29, 0  ;;  %s1146_s24 = smov [#allocation2]  }
  0x17   :  { %929 = vmatpush3.bf16.msra.mxu0 %v1233_v11  ;;  %v37_v22 = vld [vmem:[%s1556_s1 + $0x68] sm:$0xff]  ;;  %v38_v23 = vld [vmem:[%s1556_s1 + $0x70] sm:$0xff]  ;;  %v39_v24 = vld [vmem:[%s1556_s1 + $0x78] sm:$0xff]  ;;  %s812_s25 = sshll.u32 %s1146_s24, 4  ;;  %vm802_vm7 = vcmask 253952   ;;  %s813_s25 = int_to_ptr.vmem [resolvable:$true] %s812_s25 }
  0x18   :  { %930 = vmatprep.subr.bf16.mxu0 %v1142_v1  ;;  %v1110_v27 = vld [vmem:[%s1557_s2] sm:$0xff]   ;;  %v1111_v37 = vld [vmem:[%s1557_s2 + $0x8] sm:$0xff]   ;;  %v78_v38 = vld [vmem:[%s1558_s3 + $0x10] sm:$0xff]  ;;  %s1118_s26 = scalar_lea.vmem %s813_s25, 16  ;;  %s1122_s27 = scalar_lea.vmem %s813_s25, 32 }
  0x19   :  { %942 = vmatprep.mubr.msk.bf16.mxu1 %vm196_vm1, %v1110_v27  ;;  %v76_v39 = vld [vmem:[%s1558_s3] sm:$0xff]  ;;  %v79_v41 = vld [vmem:[%s1558_s3 + $0x18] sm:$0xff]  ;;  %v77_v44 = vld [vmem:[%s1558_s3 + $0x8] sm:$0xff]  ;;  %p1119_p0 = scmp.ne.s32.totalorder %s813_s25, %s1118_s26  ;;  %p1123_p1 = scmp.lt.s32.totalorder %s813_s25, %s813_s25 }
  0x1a   :  { %46 = vxpose.xlu0.b32.cont [7/16] (narrow) %v30_v12, 8  ;;  %v1112_v56 = vld [vmem:[%s1557_s2 + $0x10] sm:$0xff]   ;;  %v1113_v63 = vld [vmem:[%s1557_s2 + $0x18] sm:$0xff]   ;;  %v1114_v0 = vld [vmem:[%s1557_s2 + $0x20] sm:$0xff]   ;;  %p1124_p2 = scmp.lt.s32.totalorder %s1122_s27, %s1118_s26 }
  0x1b   :  { %931 = vmatpush3.bf16.msra.mxu0 %v1243_v13  ;;  %v1115_v2 = vld [vmem:[%s1557_s2 + $0x28] sm:$0xff]   ;;  %v1116_v3 = vld [vmem:[%s1557_s2 + $0x30] sm:$0xff]   ;;  %v271_v8 = vld [vmem:[%s1558_s3 + $0x20] sm:$0xff] }
  0x1c   :  { %932 = vmatprep.subr.bf16.mxu0 %v1142_v1  ;;  %v273_v6 = vld [vmem:[%s1558_s3 + $0x30] sm:$0xff]  ;;  %v274_v12 = vld [vmem:[%s1558_s3 + $0x38] sm:$0xff]  ;;  %p1125_p3 = por %p1124_p2, %p1123_p1 }
  0x1d   :  { %v277_v28 = vld [vmem:[%s1558_s3 + $0x50] sm:$0xff] }
  0x1e   :  { %47 = vxpose.xlu0.b32.cont [8/16] (narrow) %v31_v14, 8  ;;  %p1126_p4 = pnand %p1125_p3, %p1119_p0 }
  0x1f   :  { %933 = vmatpush3.bf16.msra.mxu0 %v1253_v15 }
  0x20   :  { %934 = vmatprep.subr.bf16.mxu0 %v1142_v1 }
  0x22   :  { %48 = vxpose.xlu0.b32.cont [9/16] (narrow) %v32_v16, 8 }
  0x23   :  { %935 = vmatpush3.bf16.msra.mxu0 %v1263_v17 }
  0x26   :  { %49 = vxpose.xlu0.b32.cont [10/16] (narrow) %v33_v18, 8  ;;  %v272_v18 = vld [vmem:[%s1558_s3 + $0x28] sm:$0xff] }
  0x2a   :  { %50 = vxpose.xlu0.b32.cont [11/16] (narrow) %v34_v19, 8 }
  0x2e   :  { %51 = vxpose.xlu0.b32.cont [12/16] (narrow) %v35_v20, 8 }
  0x32   :  { %52 = vxpose.xlu0.b32.cont [13/16] (narrow) %v36_v21, 8 }
  0x36   :  { %53 = vxpose.xlu0.b32.cont [14/16] (narrow) %v37_v22, 8 }
  0x3a   :  { %54 = vxpose.xlu0.b32.cont [15/16] (narrow) %v38_v23, 8 }
  0x3e   :  { %55 = vxpose.xlu0.b32.end [16/16] (narrow) %v39_v24, 8 }
  0x82   :  { %v56_v25 = vpop.trf.xlu0 }
  0x83   :  { %v80_v26 = vpack.c.bf16 %v56_v25, %v56_v25 }
  0x85   :  { %937 = vmatmul.mubr.bf16.vlgmr.msra.gmra.mrb[0].mxu0 %v80_v26 }
  0x86   :  { %970 = vmatprep.mubr.msk.bf16.mxu0 %vm352_vm4, %v1112_v56  ;;  %v442_v56 = vld [vmem:[%s1558_s3 + $0x60] sm:$0xff] }
 0x158   :  { %v179_v30 = vpop.f32.mrb[0].mxu0 }
 0x159   :  { %v185_v32 = vpack.c.bf16 %v179_v30, %v179_v30  ;;  %v938_v33 = vpop.f32.mrb[1].mxu0  ;;  %v275_v30 = vld [vmem:[%s1558_s3 + $0x40] sm:$0xff] }
 0x15a   :  { %v182_v34 = vpop.f32.mrb[2].mxu0  ;;  %v278_v33 = vld [vmem:[%s1558_s3 + $0x58] sm:$0xff] }
 0x15b   :  { %v939_v35 = vpop.f32.mrb[3].mxu0  ;;  %v208_v36 = vand.u32 %v206_v31, %v185_v32 }
 0x15d   :  { %940 = vmatprep.subr.bf16.mxu1 %v208_v36 }
 0x15e   :  { %941 = vmatpush3.bf16.msra.mxu1 %v208_v36  ;;  %v276_v36 = vld [vmem:[%s1558_s3 + $0x48] sm:$0xff] }
 0x15f   :  { %946 = vmatprep.subr.bf16.mxu1 %v1197_v4 }
 0x161   :  { %943 = vmatmul.mubr.msk.bf16.vlgmr.msra.gmra.mrb[0].mxu1 %vm196_vm1, %v1111_v37 }
 0x162   :  { %947 = vmatpush3.bf16.msra.mxu1 %v1197_v4 }
 0x163   :  { %948 = vmatprep.subr.bf16.mxu1 %v1203_v5 }
 0x166   :  { %949 = vmatpush3.bf16.msra.mxu1 %v1203_v5 }
 0x167   :  { %950 = vmatprep.subr.bf16.mxu1 %v1213_v7 }
 0x16a   :  { %951 = vmatpush3.bf16.msra.mxu1 %v1213_v7 }
 0x16b   :  { %952 = vmatprep.subr.bf16.mxu1 %v1222_v9 }
 0x16e   :  { %953 = vmatpush3.bf16.msra.mxu1 %v1222_v9 }
 0x16f   :  { %954 = vmatprep.subr.bf16.mxu1 %v1233_v11 }
 0x172   :  { %955 = vmatpush3.bf16.msra.mxu1 %v1233_v11 }
 0x173   :  { %956 = vmatprep.subr.bf16.mxu1 %v1243_v13 }
 0x176   :  { %957 = vmatpush3.bf16.msra.mxu1 %v1243_v13 }
 0x177   :  { %958 = vmatprep.subr.bf16.mxu1 %v1253_v15 }
 0x17a   :  { %959 = vmatpush3.bf16.msra.mxu1 %v1253_v15 }
 0x17b   :  { %960 = vmatprep.subr.bf16.mxu1 %v1263_v17 }
 0x17e   :  { %961 = vmatpush3.bf16.msra.mxu1 %v1263_v17 }
 0x234   :  { %v944_v40 = vpop.f32.mrb[0].mxu1 }
 0x235   :  { %v253_v42 = vadd.f32 %v944_v40, %v78_v38  ;;  %v244_v43 = vpop.f32.mrb[1].mxu1 }
 0x236   :  { %v245_v45 = vadd.f32 %v244_v43, %v76_v39  ;;  %v945_v46 = vpop.f32.mrb[2].mxu1 }
 0x237   :  { %v256_v47 = vadd.f32 %v945_v46, %v79_v41  ;;  %v247_v48 = vpop.f32.mrb[3].mxu1  ;;  %v261_v50 = vmax.f32 %v253_v42, 0.0 }
 0x238   :  { %v248_v49 = vadd.f32 %v247_v48, %v77_v44  ;;  %v259_v52 = vmax.f32 %v245_v45, 0.0  ;;  %v1117_v48 = vld [vmem:[%s1557_s2 + $0x38] sm:$0xff]  }
 0x239   :  { %v262_v51 = vmax.f32 %v256_v47, 0.0 }
 0x23a   :  { %v260_v53 = vmax.f32 %v248_v49, 0.0 }
 0x23b   :  { %v280_v54 = vpack.c.bf16 %v262_v51, %v261_v50 }
 0x23c   :  { %v279_v55 = vpack.c.bf16 %v260_v53, %v259_v52 }
 0x23e   :  { %962 = vmatprep.mubr.bf16.mxu1 %v279_v55  ;;  %v444_v55 = vld [vmem:[%s1558_s3 + $0x70] sm:$0xff] }
 0x23f   :  { %963 = vmatmul.mubr.bf16.vlgmr.msra.gmra.mrb[4].mxu1 %v280_v54 }
 0x240   :  { %986 = vmatprep.mubr.msk.bf16.mxu1 %vm460_vm5, %v1116_v3 }
 0x312   :  { %v964_v57 = vpop.f32.mrb[4].mxu1 }
 0x313   :  { %v315_v58 = vpop.f32.mrb[5].mxu1 }
 0x314   :  { %v965_v59 = vpop.f32.mrb[6].mxu1 }
 0x315   :  { %v331_v60 = vpack.c.bf16 %v965_v59, %v964_v57  ;;  %v318_v61 = vpop.f32.mrb[7].mxu1 }
 0x316   :  { %v330_v62 = vpack.c.bf16 %v318_v61, %v315_v58  ;;  %v445_v58 = vld [vmem:[%s1558_s3 + $0x78] sm:$0xff]  ;;  %v443_v61 = vld [vmem:[%s1558_s3 + $0x68] sm:$0xff] }
 0x318   :  { %966 = vmatprep.subr.bf16.mxu0 %v330_v62 }
 0x319   :  { %967 = vmatpush3.bf16.msra.mxu0 %v330_v62 }
 0x31a   :  { %968 = vmatprep.subr.bf16.mxu0 %v331_v60 }
 0x31d   :  { %969 = vmatpush3.bf16.msra.mxu0 %v331_v60 }
 0x31e   :  { %990 = vmatprep.subr.bf16.mxu0 %v1197_v4 }
 0x320   :  { %971 = vmatmul.mubr.msk.bf16.vlgmr.msra.gmra.mrb[4].mxu0 %vm352_vm4, %v1113_v63 }
 0x321   :  { %974 = vmatprep.mubr.msk.bf16.mxu0 %vm352_vm4, %v1114_v0  ;;  %991 = vmatpush3.bf16.msra.mxu0 %v1197_v4 }
 0x322   :  { %992 = vmatprep.subr.bf16.mxu0 %v1203_v5 }
 0x325   :  { %993 = vmatpush3.bf16.msra.mxu0 %v1203_v5 }
 0x326   :  { %994 = vmatprep.subr.bf16.mxu0 %v1213_v7 }
 0x328   :  { %975 = vmatmul.mubr.msk.bf16.gmra.mrb[8].mxu0 %vm352_vm4, %v1115_v2 }
 0x329   :  { %995 = vmatpush3.bf16.msra.mxu0 %v1213_v7 }
 0x32a   :  { %996 = vmatprep.subr.bf16.mxu0 %v1222_v9 }
 0x32d   :  { %997 = vmatpush3.bf16.msra.mxu0 %v1222_v9 }
 0x32e   :  { %998 = vmatprep.subr.bf16.mxu0 %v1233_v11 }
 0x331   :  { %999 = vmatpush3.bf16.msra.mxu0 %v1233_v11 }
 0x332   :  { %1000 = vmatprep.subr.bf16.mxu0 %v1243_v13 }
 0x335   :  { %1001 = vmatpush3.bf16.msra.mxu0 %v1243_v13 }
 0x336   :  { %1002 = vmatprep.subr.bf16.mxu0 %v1253_v15 }
 0x339   :  { %1003 = vmatpush3.bf16.msra.mxu0 %v1253_v15 }
 0x33a   :  { %1004 = vmatprep.subr.bf16.mxu0 %v1263_v17 }
 0x33d   :  { %1005 = vmatpush3.bf16.msra.mxu0 %v1263_v17 }
 0x3f3   :  { %v972_v10 = vpop.f32.mrb[4].mxu0 }
 0x3f4   :  { %v408_v14 = vadd.f32 %v972_v10, %v273_v6  ;;  %v399_v16 = vpop.f32.mrb[5].mxu0 }
 0x3f5   :  { %v400_v19 = vadd.f32 %v399_v16, %v271_v8  ;;  %v973_v20 = vpop.f32.mrb[6].mxu0 }
 0x3f6   :  { %v411_v21 = vadd.f32 %v973_v20, %v274_v12  ;;  %v402_v22 = vpop.f32.mrb[7].mxu0  ;;  %v432_v24 = vmax.f32 %v408_v14, 0.0  ;;  %v722_v20 = vld [vmem:[%s1559_s4 + $0x30] sm:$0xff] }
 0x3f7   :  { %v403_v23 = vadd.f32 %v402_v22, %v272_v18  ;;  %v430_v26 = vmax.f32 %v400_v19, 0.0  ;;  %v571_v18 = vld [vmem:[%s1557_s2 + $0x40] sm:$0x3] }
 0x3f8   :  { %v433_v25 = vmax.f32 %v411_v21, 0.0  ;;  %v723_v21 = vld [vmem:[%s1559_s4 + $0x38] sm:$0xff] }
 0x3f9   :  { %v431_v27 = vmax.f32 %v403_v23, 0.0  ;;  %v1083_v22 = vpack.c.bf16 %v723_v21, %v722_v20 }
 0x3fa   :  { %v447_v29 = vpack.c.bf16 %v433_v25, %v432_v24 }
 0x3fb   :  { %v446_v31 = vpack.c.bf16 %v431_v27, %v430_v26  ;;  %v976_v32 = vpop.f32.mrb[8].mxu0 }
 0x3fc   :  { %v424_v34 = vadd.f32 %v976_v32, %v277_v28  ;;  %v415_v35 = vpop.f32.mrb[9].mxu0  ;;  %v724_v28 = vld [vmem:[%s1559_s4 + $0x40] sm:$0xff]  ;;  %v727_v32 = vld [vmem:[%s1559_s4 + $0x58] sm:$0xff] }
 0x3fd   :  { %v416_v37 = vadd.f32 %v415_v35, %v275_v30  ;;  %v977_v38 = vpop.f32.mrb[10].mxu0  ;;  %978 = vmatprep.subr.bf16.mxu1 %v446_v31  ;;  %v729_v35 = vld [vmem:[%s1559_s4 + $0x68] sm:$0xff] }
 0x3fe   :  { %v427_v39 = vadd.f32 %v977_v38, %v278_v33  ;;  %v418_v40 = vpop.f32.mrb[11].mxu0  ;;  %979 = vmatpush3.bf16.msra.mxu1 %v446_v31  ;;  %v436_v42 = vmax.f32 %v424_v34, 0.0  ;;  %v726_v31 = vld [vmem:[%s1559_s4 + $0x50] sm:$0xff]  ;;  %v728_v34 = vld [vmem:[%s1559_s4 + $0x60] sm:$0xff]  ;;  %v731_v38 = vld [vmem:[%s1559_s4 + $0x78] sm:$0xff] }
 0x3ff   :  { %v419_v41 = vadd.f32 %v418_v40, %v276_v36  ;;  %980 = vmatprep.subr.bf16.mxu1 %v447_v29  ;;  %v434_v44 = vmax.f32 %v416_v37, 0.0  ;;  %v1089_v33 = vpack.c.bf16 %v727_v32, %v726_v31  ;;  %v1092_v36 = vpack.c.bf16 %v729_v35, %v728_v34  ;;  %v730_v37 = vld [vmem:[%s1559_s4 + $0x70] sm:$0xff]  ;;  %v572_v40 = vld [vmem:[%s1558_s3 + $0x80] sm:$0x7] }
 0x400   :  { %v437_v43 = vmax.f32 %v427_v39, 0.0  ;;  %v1095_v39 = vpack.c.bf16 %v731_v38, %v730_v37 }
 0x401   :  { %v435_v45 = vmax.f32 %v419_v41, 0.0 }
 0x402   :  { %v449_v46 = vpack.c.bf16 %v437_v43, %v436_v42  ;;  %981 = vmatpush3.bf16.msra.mxu1 %v447_v29  ;;  %v725_v29 = vld [vmem:[%s1559_s4 + $0x48] sm:$0xff] }
 0x403   :  { %v448_v47 = vpack.c.bf16 %v435_v45, %v434_v44  ;;  %v1086_v30 = vpack.c.bf16 %v725_v29, %v724_v28 }
 0x405   :  { %982 = vmatprep.subr.bf16.mxu1 %v448_v47 }
 0x406   :  { %983 = vmatpush3.bf16.msra.mxu1 %v448_v47 }
 0x407   :  { %984 = vmatprep.subr.bf16.mxu1 %v449_v46 }
 0x40a   :  { %985 = vmatpush3.bf16.msra.mxu1 %v449_v46 }
 0x40b   :  { %1010 = vmatprep.subr.bf16.mxu1 %v1142_v1 }
 0x40d   :  { %987 = vmatmul.mubr.msk.bf16.vlgmr.msra.gmra.mrb[8].mxu1 %vm460_vm5, %v1117_v48 }
 0x40e   :  { %1014 = vmatprep.mubr.msk.bf16.mxu1 %vm1143_vm0, %v1142_v1 }
 0x4e0   :  { %v988_v49 = vpop.f32.mrb[8].mxu1 }
 0x4e1   :  { %v501_v50 = vpop.f32.mrb[9].mxu1 }
 0x4e2   :  { %v989_v51 = vpop.f32.mrb[10].mxu1 }
 0x4e3   :  { %v517_v52 = vpack.c.bf16 %v989_v51, %v988_v49  ;;  %v504_v53 = vpop.f32.mrb[11].mxu1 }
 0x4e4   :  { %v516_v54 = vpack.c.bf16 %v504_v53, %v501_v50 }
 0x4e6   :  { %1006 = vmatprep.mubr.bf16.mxu0 %v516_v54 }
 0x4e7   :  { %1007 = vmatmul.mubr.bf16.vlgmr.msra.gmra.mrb[12].mxu0 %v517_v52 }
 0x4e8   :  { %1070 = vmatprep.mubr.msk.f32.mxu0 %vm1143_vm0, %v1142_v1 }
 0x5ba   :  { %v1008_v57 = vpop.f32.mrb[12].mxu0 }
 0x5bb   :  { %v561_v59 = vadd.f32 %v1008_v57, %v444_v55  ;;  %v552_v60 = vpop.f32.mrb[13].mxu0 }
 0x5bc   :  { %v553_v62 = vadd.f32 %v552_v60, %v442_v56  ;;  %v1009_v63 = vpop.f32.mrb[14].mxu0 }
 0x5bd   :  { %v564_v0 = vadd.f32 %v1009_v63, %v445_v58  ;;  %v555_v2 = vpop.f32.mrb[15].mxu0  ;;  %v569_v6 = vmax.f32 %v561_v59, 0.0 }
 0x5be   :  { %v556_v3 = vadd.f32 %v555_v2, %v443_v61  ;;  %v567_v10 = vmax.f32 %v553_v62, 0.0 }
 0x5bf   :  { %v570_v8 = vmax.f32 %v564_v0, 0.0 }
 0x5c0   :  { %v568_v12 = vmax.f32 %v556_v3, 0.0 }
 0x5c1   :  { %v574_v14 = vpack.c.bf16 %v570_v8, %v569_v6 }
 0x5c2   :  { %v573_v16 = vpack.c.bf16 %v568_v12, %v567_v10 }
 0x5c4   :  { %1011 = vmatpush3.bf16.msra.mxu1 %v573_v16 }
 0x5c5   :  { %1012 = vmatprep.subr.bf16.mxu1 %v1142_v1 }
 0x5c8   :  { %1013 = vmatpush3.bf16.msra.mxu1 %v574_v14 }
 0x5c9   :  { %1018 = vmatprep.subr.bf16.mxu1 %v1142_v1 }
 0x5cb   :  { %1015 = vmatmul.mubr.msk.bf16.vlgmr.msra.gmra.mrb[12].mxu1 %vm352_vm4, %v571_v18 }
 0x5cc   :  { %1019 = vmatpush3.bf16.msra.mxu1 %v1197_v4  ;;  %1034 = vmatprep.mubr.msk.bf16.mxu1 %vm1143_vm0, %v1142_v1  ;;  %v716_v4 = vld [vmem:[%s1559_s4] sm:$0xff] }
 0x5cd   :  { %1020 = vmatprep.subr.bf16.mxu1 %v1142_v1 }
 0x5d0   :  { %1021 = vmatpush3.bf16.msra.mxu1 %v1203_v5  ;;  %v717_v5 = vld [vmem:[%s1559_s4 + $0x8] sm:$0xff] }
 0x5d1   :  { %1022 = vmatprep.subr.bf16.mxu1 %v1142_v1 }
 0x5d4   :  { %1023 = vmatpush3.bf16.msra.mxu1 %v1213_v7  ;;  %v718_v7 = vld [vmem:[%s1559_s4 + $0x10] sm:$0xff] }
 0x5d5   :  { %1024 = vmatprep.subr.bf16.mxu1 %v1142_v1 }
 0x5d8   :  { %1025 = vmatpush3.bf16.msra.mxu1 %v1222_v9  ;;  %v1145_v9 = vmov 0.0|0.0  }
 0x5d9   :  { %1026 = vmatprep.subr.bf16.mxu1 %v1142_v1  ;;  %1073 = vmatprep.subr.bf16.mxu0 %v1145_v9 }
 0x5dc   :  { %1027 = vmatpush3.bf16.msra.mxu1 %v1233_v11  ;;  %v1074_v11 = vpack.c.bf16 %v717_v5, %v716_v4 }
 0x5dd   :  { %1028 = vmatprep.subr.bf16.mxu1 %v1142_v1 }
 0x5de   :  { %1075 = vmatpush3.bf16.msra.mxu0 %v1074_v11 }
 0x5df   :  { %1076 = vmatprep.subr.bf16.mxu0 %v1145_v9 }
 0x5e0   :  { %1029 = vmatpush3.bf16.msra.mxu1 %v1243_v13 }
 0x5e1   :  { %1030 = vmatprep.subr.bf16.mxu1 %v1142_v1 }
 0x5e4   :  { %1031 = vmatpush3.bf16.msra.mxu1 %v1253_v15  ;;  %v720_v15 = vld [vmem:[%s1559_s4 + $0x20] sm:$0xff] }
 0x5e5   :  { %1032 = vmatprep.subr.bf16.mxu1 %v1142_v1  ;;  %v719_v1 = vld [vmem:[%s1559_s4 + $0x18] sm:$0xff] }
 0x5e6   :  { %v1077_v13 = vpack.c.bf16 %v719_v1, %v718_v7 }
 0x5e8   :  { %1033 = vmatpush3.bf16.msra.mxu1 %v1263_v17  ;;  %v721_v17 = vld [vmem:[%s1559_s4 + $0x28] sm:$0xff]  ;;  %1078 = vmatpush3.bf16.msra.mxu0 %v1077_v13 }
 0x5e9   :  { %v1080_v19 = vpack.c.bf16 %v721_v17, %v720_v15  ;;  %1079 = vmatprep.subr.bf16.mxu0 %v1145_v9 }
 0x5ec   :  { %1081 = vmatpush3.bf16.msra.mxu0 %v1080_v19 }
 0x5ed   :  { %1082 = vmatprep.subr.bf16.mxu0 %v1145_v9 }
 0x5f0   :  { %1084 = vmatpush3.bf16.msra.mxu0 %v1083_v22 }
 0x5f1   :  { %1085 = vmatprep.subr.bf16.mxu0 %v1145_v9 }
 0x5f4   :  { %1087 = vmatpush3.bf16.msra.mxu0 %v1086_v30 }
 0x5f5   :  { %1088 = vmatprep.subr.bf16.mxu0 %v1145_v9 }
 0x5f8   :  { %1090 = vmatpush3.bf16.msra.mxu0 %v1089_v33 }
 0x5f9   :  { %1091 = vmatprep.subr.bf16.mxu0 %v1145_v9 }
 0x5fc   :  { %1093 = vmatpush3.bf16.msra.mxu0 %v1092_v36 }
 0x5fd   :  { %1094 = vmatprep.subr.bf16.mxu0 %v1145_v9 }
 0x600   :  { %1096 = vmatpush3.bf16.msra.mxu0 %v1095_v39 }
 0x69e   :  { %v612_v23 = vpop.f32.mrb[12].mxu1 }
 0x69f   :  { %v618_v24 = vpack.c.bf16 %v612_v23, %v612_v23  ;;  %v1016_v25 = vpop.f32.mrb[13].mxu1 }
 0x6a0   :  { %v615_v26 = vpop.f32.mrb[14].mxu1 }
 0x6a1   :  { %v1017_v27 = vpop.f32.mrb[15].mxu1  ;;  %1035 = vmatmul.mubr.bf16.vlgmr.msra.gmra.mrb[16].mxu1 %v618_v24 }
 0x774   :  { %v653_v41 = vpop.f32.mrb[16].mxu1 }
 0x775   :  { %v654_v42 = vadd.f32 %v653_v41, %v572_v40  ;;  %v1036_v43 = vpop.f32.mrb[17].mxu1 }
 0x776   :  { %v656_v44 = vpop.f32.mrb[18].mxu1 }
 0x777   :  { %v659_v45 = vmax.f32 %v654_v42, 0.0  ;;  %v1037_v46 = vpop.f32.mrb[19].mxu1 }
 0x779   :  { %v709_v47 = vsel %vm708_vm6, %v659_v45, 0.0  ;;  %660 = vxpose.xlu1.b32.start.end [1/1] (short) %v659_v45, 128 }
 0x77a   :  { %v710_v48 = vrot.slane %v709_v47, 4 }
 0x77c   :  { %v711_v49 = vadd.f32 %v710_v48, %v709_v47 }
 0x77e   :  { %v712_v50 = vrot.slane %v711_v49, 2 }
 0x780   :  { %v713_v51 = vadd.f32 %v712_v50, %v711_v49 }
 0x782   :  { %v714_v52 = vrot.slane %v713_v51, 1 }
 0x784   :  { %v715_v53 = vadd.f32 %v714_v52, %v713_v51 }
 0x786   :  { %1071 = vmatmul.mubr.f32.vlgmr.msra.gmra.mrb[16].mxu0 %v715_v53 }
 0x7f9   :  { %v676_v54 = vpop.trf.xlu1 }
 0x7fa   :  { %692 = vst.msk [vmem:[%s1560_s5] sm:$0xff] %vm196_vm1, %v676_v54 }
 0x7fd   :  { %v677_v55 = vpop.trf.xlu1 }
 0x7fe   :  { %693 = vst.msk [vmem:[%s1560_s5 + $0x8] sm:$0xff] %vm196_vm1, %v677_v55 }
 0x801   :  { %v678_v56 = vpop.trf.xlu1 }
 0x802   :  { %694 = vst.msk [vmem:[%s1560_s5 + $0x10] sm:$0xff] %vm196_vm1, %v678_v56 }
 0x805   :  { %v679_v57 = vpop.trf.xlu1 }
 0x806   :  { %695 = vst.msk [vmem:[%s1560_s5 + $0x18] sm:$0xff] %vm196_vm1, %v679_v57 }
 0x809   :  { %v680_v58 = vpop.trf.xlu1 }
 0x80a   :  { %696 = vst.msk [vmem:[%s1560_s5 + $0x20] sm:$0xff] %vm196_vm1, %v680_v58 }
 0x80d   :  { %v681_v59 = vpop.trf.xlu1 }
 0x80e   :  { %697 = vst.msk [vmem:[%s1560_s5 + $0x28] sm:$0xff] %vm196_vm1, %v681_v59 }
 0x811   :  { %v682_v60 = vpop.trf.xlu1 }
 0x812   :  { %698 = vst.msk [vmem:[%s1560_s5 + $0x30] sm:$0xff] %vm196_vm1, %v682_v60 }
 0x815   :  { %v683_v61 = vpop.trf.xlu1 }
 0x816   :  { %699 = vst.msk [vmem:[%s1560_s5 + $0x38] sm:$0xff] %vm196_vm1, %v683_v61 }
 0x819   :  { %v684_v62 = vpop.trf.xlu1 }
 0x81a   :  { %700 = vst.msk [vmem:[%s1560_s5 + $0x40] sm:$0xff] %vm196_vm1, %v684_v62 }
 0x81d   :  { %v685_v63 = vpop.trf.xlu1 }
 0x81e   :  { %701 = vst.msk [vmem:[%s1560_s5 + $0x48] sm:$0xff] %vm196_vm1, %v685_v63 }
 0x821   :  { %v686_v0 = vpop.trf.xlu1 }
 0x822   :  { %702 = vst.msk [vmem:[%s1560_s5 + $0x50] sm:$0xff] %vm196_vm1, %v686_v0 }
 0x825   :  { %v687_v2 = vpop.trf.xlu1 }
 0x826   :  { %703 = vst.msk [vmem:[%s1560_s5 + $0x58] sm:$0xff] %vm196_vm1, %v687_v2 }
 0x829   :  { %v688_v3 = vpop.trf.xlu1 }
 0x82a   :  { %704 = vst.msk [vmem:[%s1560_s5 + $0x60] sm:$0xff] %vm196_vm1, %v688_v3 }
 0x82d   :  { %v689_v6 = vpop.trf.xlu1 }
 0x82e   :  { %705 = vst.msk [vmem:[%s1560_s5 + $0x68] sm:$0xff] %vm196_vm1, %v689_v6 }
 0x831   :  { %v690_v8 = vpop.trf.xlu1 }
 0x832   :  { %706 = vst.msk [vmem:[%s1560_s5 + $0x70] sm:$0xff] %vm196_vm1, %v690_v8 }
 0x835   :  { %v691_v10 = vpop.trf.xlu1 }
 0x836   :  { %707 = vst.msk [vmem:[%s1560_s5 + $0x78] sm:$0xff] %vm196_vm1, %v691_v10 }
 0x859   :  { %v798_v12 = vpop.f32.mrb[16].mxu0 }
 0x85a   :  { %803 = vst.msk [vmem:[#allocation2] sm:$0x1] %vm802_vm7, %v798_v12  ;;  %v1072_v14 = vpop.f32.mrb[17].mxu0 }
 0x85b   :  { %1129 = shalt.err (!%p1126_p4)
}
 0x85c   :  { %s1130_s30 = scalar_lea.hbm %s1561_s6, 16 }
 0x85d   :  { %p1131_p5 = scmp.ne.s32.totalorder %s1561_s6, %s1130_s30  ;;  %p1134_p6 = scmp.lt.u32.totalorder %s1130_s30, %s1561_s6 }
 0x85f   :  { %p1136_p7 = pnand %p1134_p6, %p1131_p5 }
 0x861   :  { %1139 = shalt.err (!%p1136_p7)
}
 0x862   :  { %815 = dma.vmem_to_hbm [thread:$0]  %s813_s25, 16, %s1561_s6, [#allocation3]  }
 0x863   :  { %1140 = dma.done.wait [#allocation3], 16  }
 0x864   :  { %1141 = vsyncadd [#allocation3], 4294967280 }
 0x865   :  { %821 = vsyncpa [#allocation3], 1 }

</bundles_post_ra>
